<compile_context>
chip_gen: v7x
topology: tpu7x:2x2x1
jax: 0.10.0
libtpu: 0.0.40
codegen_flags: <defaults>
</compile_context>

<pallas_src>
import functools

import jax
import jax.numpy as jnp
from jax.experimental import pallas as pl
from jax.experimental.pallas import tpu as pltpu

_LANE = 128            # batch tile must be a multiple of the 128-lane vreg width
_MAX_TILE = 32768      # lanes per batch tile: x block 6*32768*4B = 768 KiB (x2 buffers),
                       # out block 256 KiB (x2), f32 intermediates ~3 MiB -> ~5-6 MiB
                       # VMEM total, under the 16 MiB (v5e) / 32 MiB (v6e/v7x) default.
_MIN_SPLIT_TILE = 16384  # only force >= 2 grid steps (v7x megacore) if each half keeps
                         # at least this many lanes; otherwise per-step overhead wins.


def fcnet_kernel(x_ref, w1_ref, b1_ref, w2_ref, b2_ref, w3_ref, b3_ref, o_ref):
    # Batch lives on the lane axis: every load / MXU pass / store is lane-dense.
    # x_ref: (6, TB); weights are (out, in) (PyTorch layout); biases are (out, 1)
    # and broadcast along the lanes.  f32 end-to-end to match PyTorch numerics.
    h1 = jnp.dot(w1_ref[...], x_ref[...], preferred_element_type=jnp.float32)
    h1 = jnp.maximum(h1 + b1_ref[...], 0.0)
    h2 = jnp.dot(w2_ref[...], h1, preferred_element_type=jnp.float32)
    h2 = jnp.maximum(h2 + b2_ref[...], 0.0)
    out = jnp.dot(w3_ref[...], h2, preferred_element_type=jnp.float32)
    o_ref[...] = (out + b3_ref[...]).astype(o_ref.dtype)


def _round_up(a, m):
    return (a + m - 1) // m * m


@functools.partial(jax.jit, static_argnames=("max_tile",))
def fcnet_forward(x, params, *, max_tile=_MAX_TILE):
    """x: (B, 6) float32. params: (w1, b1, w2, b2, w3, b3), w = (out, in), b = (out,)."""
    w1, b1, w2, b2, w3, b3 = params
    B = x.shape[0]

    # Pad the batch only to a multiple of 128 lanes (<128 wasted columns); if the
    # tile does not divide b128, Pallas' partial edge blocks mask the overhang.
    b128 = _round_up(B, _LANE)

    # Batch tile: as large as possible to amortize the ~0.35 us/grid-step fixed
    # cost; if there is enough work, keep >= 2 steps so the "parallel" axis can
    # be split across v7x's two TensorCores.
    if b128 >= 2 * _MIN_SPLIT_TILE:
        tb = min(max_tile, _round_up(pl.cdiv(b128, 2), _LANE))
    else:
        tb = min(max_tile, b128)
    grid = pl.cdiv(b128, tb)

    # Single fused pad+transpose into the kernel's lane-dense (6, b128) layout.
    # TODO(synk): if the producer/consumer can hand over feature-major (6, B)
    # activations (and accept (2, B) back), drop this and the final .T to remove
    # the remaining wrapper HBM round-trips; x could also be streamed as bf16
    # (f32 accumulation unchanged) to halve input DMA if numerics allow.
    x_t = jnp.pad(x, ((0, b128 - B), (0, 0))).T

    # Biases as (out, 1) so they broadcast along the lane (batch) axis.
    b1c = b1.reshape(-1, 1)
    b2c = b2.reshape(-1, 1)
    b3c = b3.reshape(-1, 1)

    n_param = 12 * 6 + 12 + 12 * 12 + 12 + 2 * 12 + 2
    cost = pl.CostEstimate(
        flops=480 * b128,                    # 2*(6*12 + 12*12 + 12*2) per sample
        transcendentals=0,
        bytes_accessed=4 * ((6 + 2) * b128 + n_param),
    )

    full = lambda a: pl.BlockSpec(a.shape, lambda i: (0, 0))
    out_t = pl.pallas_call(
        fcnet_kernel,
        out_shape=jax.ShapeDtypeStruct((2, b128), jnp.float32),
        grid=(grid,),
        in_specs=[
            pl.BlockSpec((6, tb), lambda i: (0, i)),   # x tile: batch on lanes
            full(w1), full(b1c),                       # weights/biases stay VMEM-resident
            full(w2), full(b2c),                       # (constant index maps — keep them)
            full(w3), full(b3c),
        ],
        out_specs=pl.BlockSpec((2, tb), lambda i: (0, i)),
        compiler_params=pltpu.CompilerParams(
            dimension_semantics=("parallel",)),
        cost_estimate=cost,
    )(x_t, w1, b1c, w2, b2c, w3, b3c)

    # Drop the <128-column batch padding; return (B, 2) like the PyTorch module.
    return out_t[:, :B].T


def init_params(key):
    # torch.nn.Linear-style init: uniform(-1/sqrt(fan_in), 1/sqrt(fan_in)),
    # weights in PyTorch's native (out_features, in_features) layout.
    def linear(k, fan_in, fan_out):
        kw, kb = jax.random.split(k)
        bound = 1.0 / jnp.sqrt(float(fan_in))
        w = jax.random.uniform(kw, (fan_out, fan_in), jnp.float32, -bound, bound)
        b = jax.random.uniform(kb, (fan_out,), jnp.float32, -bound, bound)
        return w, b

    k1, k2, k3 = jax.random.split(key, 3)
    w1, b1 = linear(k1, 6, 12)
    w2, b2 = linear(k2, 12, 12)
    w3, b3 = linear(k3, 12, 2)
    return (w1, b1, w2, b2, w3, b3)


def _reference(x, params):
    # Plain-JAX reference with PyTorch semantics: y = x @ W.T + b.
    w1, b1, w2, b2, w3, b3 = params
    h = jnp.maximum(x @ w1.T + b1, 0.0)
    h = jnp.maximum(h @ w2.T + b2, 0.0)
    return h @ w3.T + b3


if __name__ == "__main__":
    key = jax.random.PRNGKey(0)
    kx, kx2, kp = jax.random.split(key, 3)
    params = init_params(kp)

    # Small demo batch (single 128-lane tile, grid of 1).
    x = jax.random.normal(kx, (8, 6), jnp.float32)
    out = fcnet_forward(x, params)
    jax.block_until_ready(out)
    assert out.shape == (8, 2)
    assert jnp.allclose(out, _reference(x, params), atol=1e-4, rtol=1e-4), \
        "mismatch vs reference (batch=8)"

    # Exercise the multi-step grid + partial (masked) edge block path:
    # B=300 -> b128=384, forced tile 256 -> grid=2, last block half-masked.
    x2 = jax.random.normal(kx2, (300, 6), jnp.float32)
    out2 = fcnet_forward(x2, params, max_tile=256)
    jax.block_until_ready(out2)
    assert out2.shape == (300, 2)
    assert jnp.allclose(out2, _reference(x2, params), atol=1e-4, rtol=1e-4), \
        "mismatch vs reference (batch=300, tiled)"

    print("KERNEL_OK")
</pallas_src>

<mosaic_0001>
module attributes {stable_mosaic.version = 11 : i64} {
  func.func @fcnet_kernel(%arg0: i32, %arg1: memref<6x128xf32, #tpu.memory_space<vmem>>, %arg2: memref<12x6xf32, #tpu.memory_space<vmem>>, %arg3: memref<12x1xf32, #tpu.memory_space<vmem>>, %arg4: memref<12x12xf32, #tpu.memory_space<vmem>>, %arg5: memref<12x1xf32, #tpu.memory_space<vmem>>, %arg6: memref<2x12xf32, #tpu.memory_space<vmem>>, %arg7: memref<2x1xf32, #tpu.memory_space<vmem>>, %arg8: memref<2x128xf32, #tpu.memory_space<vmem>>) attributes {dimension_semantics = [#tpu.dimension_semantics<parallel>], iteration_bounds = array<i64: 1>, scalar_prefetch = 0 : i64, scratch_operands = 0 : i64, tpu.core_type = #tpu.core_type<tc>, window_params = [{transform_indices = @transform_0, window_bounds = array<i64: 6, 128>}, {pipeline_mode = #tpu.pipeline_mode<synchronous>, transform_indices = @transform_1, window_bounds = array<i64: 12, 6>}, {pipeline_mode = #tpu.pipeline_mode<synchronous>, transform_indices = @transform_2, window_bounds = array<i64: 12, 1>}, {pipeline_mode = #tpu.pipeline_mode<synchronous>, transform_indices = @transform_3, window_bounds = array<i64: 12, 12>}, {pipeline_mode = #tpu.pipeline_mode<synchronous>, transform_indices = @transform_4, window_bounds = array<i64: 12, 1>}, {pipeline_mode = #tpu.pipeline_mode<synchronous>, transform_indices = @transform_5, window_bounds = array<i64: 2, 12>}, {pipeline_mode = #tpu.pipeline_mode<synchronous>, transform_indices = @transform_6, window_bounds = array<i64: 2, 1>}, {transform_indices = @transform_7, window_bounds = array<i64: 2, 128>}]} {
    %c0 = arith.constant 0 : index
    %c0_0 = arith.constant 0 : index
    %0 = vector.load %arg2[%c0, %c0_0] : memref<12x6xf32, #tpu.memory_space<vmem>>, vector<12x6xf32>
    %c0_1 = arith.constant 0 : index
    %c0_2 = arith.constant 0 : index
    %1 = vector.load %arg1[%c0_1, %c0_2] : memref<6x128xf32, #tpu.memory_space<vmem>>, vector<6x128xf32>
    %cst = arith.constant dense<0.000000e+00> : vector<12x128xf32>
    %2 = tpu.matmul %0, %1, %cst {dimension_numbers = #tpu.dot_dimension_numbers<[1], [0], [0], [1], [0, 0, 1, 1], [], []>} : vector<12x6xf32>, vector<6x128xf32>, vector<12x128xf32> -> vector<12x128xf32>
    %c0_3 = arith.constant 0 : index
    %c0_4 = arith.constant 0 : index
    %3 = vector.load %arg3[%c0_3, %c0_4] : memref<12x1xf32, #tpu.memory_space<vmem>>, vector<12x1xf32>
    %4 = vector.broadcast %3 : vector<12x1xf32> to vector<12x128xf32>
    %5 = arith.addf %2, %4 : vector<12x128xf32>
    %cst_5 = arith.constant 0.000000e+00 : f32
    %6 = vector.broadcast %cst_5 : f32 to vector<12x128xf32>
    %7 = arith.maximumf %5, %6 : vector<12x128xf32>
    %c0_6 = arith.constant 0 : index
    %c0_7 = arith.constant 0 : index
    %8 = vector.load %arg4[%c0_6, %c0_7] : memref<12x12xf32, #tpu.memory_space<vmem>>, vector<12x12xf32>
    %cst_8 = arith.constant dense<0.000000e+00> : vector<12x128xf32>
    %9 = tpu.matmul %8, %7, %cst_8 {dimension_numbers = #tpu.dot_dimension_numbers<[1], [0], [0], [1], [0, 0, 1, 1], [], []>} : vector<12x12xf32>, vector<12x128xf32>, vector<12x128xf32> -> vector<12x128xf32>
    %c0_9 = arith.constant 0 : index
    %c0_10 = arith.constant 0 : index
    %10 = vector.load %arg5[%c0_9, %c0_10] : memref<12x1xf32, #tpu.memory_space<vmem>>, vector<12x1xf32>
    %11 = vector.broadcast %10 : vector<12x1xf32> to vector<12x128xf32>
    %12 = arith.addf %9, %11 : vector<12x128xf32>
    %cst_11 = arith.constant 0.000000e+00 : f32
    %13 = vector.broadcast %cst_11 : f32 to vector<12x128xf32>
    %14 = arith.maximumf %12, %13 : vector<12x128xf32>
    %c0_12 = arith.constant 0 : index
    %c0_13 = arith.constant 0 : index
    %15 = vector.load %arg6[%c0_12, %c0_13] : memref<2x12xf32, #tpu.memory_space<vmem>>, vector<2x12xf32>
    %cst_14 = arith.constant dense<0.000000e+00> : vector<2x128xf32>
    %16 = tpu.matmul %15, %14, %cst_14 {dimension_numbers = #tpu.dot_dimension_numbers<[1], [0], [0], [1], [0, 0, 1, 1], [], []>} : vector<2x12xf32>, vector<12x128xf32>, vector<2x128xf32> -> vector<2x128xf32>
    %c0_15 = arith.constant 0 : index
    %c0_16 = arith.constant 0 : index
    %17 = vector.load %arg7[%c0_15, %c0_16] : memref<2x1xf32, #tpu.memory_space<vmem>>, vector<2x1xf32>
    %18 = vector.broadcast %17 : vector<2x1xf32> to vector<2x128xf32>
    %19 = arith.addf %16, %18 : vector<2x128xf32>
    %c0_17 = arith.constant 0 : index
    %c0_18 = arith.constant 0 : index
    %20 = vector.load %arg8[%c0_17, %c0_18] : memref<2x128xf32, #tpu.memory_space<vmem>>, vector<2x128xf32>
    tpu.vector_store %arg8[%c0_17, %c0_18], %19 {strides = array<i32>} : memref<2x128xf32, #tpu.memory_space<vmem>>, vector<2x128xf32>,
    return
  }
  func.func @transform_0(%arg0: i32) -> (i32, i32) {
    %c0_i32 = arith.constant 0 : i32
    %c0_i32_0 = arith.constant 0 : i32
    return %c0_i32, %arg0 : i32, i32
  }
  func.func @transform_1(%arg0: i32) -> (i32, i32) {
    %c0_i32 = arith.constant 0 : i32
    %c0_i32_0 = arith.constant 0 : i32
    %c0_i32_1 = arith.constant 0 : i32
    return %c0_i32, %c0_i32_0 : i32, i32
  }
  func.func @transform_2(%arg0: i32) -> (i32, i32) {
    %c0_i32 = arith.constant 0 : i32
    %c0_i32_0 = arith.constant 0 : i32
    %c0_i32_1 = arith.constant 0 : i32
    return %c0_i32, %c0_i32_0 : i32, i32
  }
  func.func @transform_3(%arg0: i32) -> (i32, i32) {
    %c0_i32 = arith.constant 0 : i32
    %c0_i32_0 = arith.constant 0 : i32
    %c0_i32_1 = arith.constant 0 : i32
    return %c0_i32, %c0_i32_0 : i32, i32
  }
  func.func @transform_4(%arg0: i32) -> (i32, i32) {
    %c0_i32 = arith.constant 0 : i32
    %c0_i32_0 = arith.constant 0 : i32
    %c0_i32_1 = arith.constant 0 : i32
    return %c0_i32, %c0_i32_0 : i32, i32
  }
  func.func @transform_5(%arg0: i32) -> (i32, i32) {
    %c0_i32 = arith.constant 0 : i32
    %c0_i32_0 = arith.constant 0 : i32
    %c0_i32_1 = arith.constant 0 : i32
    return %c0_i32, %c0_i32_0 : i32, i32
  }
  func.func @transform_6(%arg0: i32) -> (i32, i32) {
    %c0_i32 = arith.constant 0 : i32
    %c0_i32_0 = arith.constant 0 : i32
    %c0_i32_1 = arith.constant 0 : i32
    return %c0_i32, %c0_i32_0 : i32, i32
  }
  func.func @transform_7(%arg0: i32) -> (i32, i32) {
    %c0_i32 = arith.constant 0 : i32
    %c0_i32_0 = arith.constant 0 : i32
    return %c0_i32, %arg0 : i32, i32
  }
}

</mosaic_0001>

<bundles_post_ra>
// kernel: fcnet_forward.1
= control target key start
LH: loop header
LB: loop body
LE: loop exit
PB: predicated region body
PF: predicated region fallthrough
CT: control target
= control target key end

     0   :  { %vm48_vm0 = vcmask 1045504   ;;  %vm41_vm1 = vcmask 48128   ;;  %v373_v3 = vmov 0   ;;  %vm143_vm2 = vcmask 97280   ;;  %s467_s0 = inlined_call_operand.vmem [shape: f32[6,128], index: 0, kind: input, shape index: {}]   ;;  %s468_s1 = inlined_call_operand.vmem [shape: f32[12,6], index: 1, kind: input, shape index: {}]   ;;  %s469_s2 = inlined_call_operand.vmem [shape: f32[12,1], index: 2, kind: input, shape index: {}]   ;;  %s470_s6 = inlined_call_operand.vmem [shape: f32[2,1], index: 6, kind: input, shape index: {}]   ;;  %s471_s3 = inlined_call_operand.vmem [shape: f32[12,12], index: 3, kind: input, shape index: {}]   ;;  %s472_s4 = inlined_call_operand.vmem [shape: f32[12,1], index: 4, kind: input, shape index: {}]   ;;  %s473_s5 = inlined_call_operand.vmem [shape: f32[2,12], index: 5, kind: input, shape index: {}]   ;;  %s474_s7 = inlined_call_operand.vmem [shape: f32[2,128], index: 7, kind: output, shape index: {}]  }
   0x1   :  { %v28_v0 = vld [vmem:[%s467_s0] sm:$0x3f]  ;;  %v27_v2 = vld [vmem:[%s468_s1 + $0x8] sm:$0xf]  ;;  %371 = vset.pattern.permute.xlu0 %v373_v3  ;;  %372 = vset.pattern.permute.xlu1 %v373_v3  ;;  %vm150_vm3 = vcmask 1043456   ;;  %vm374_vm4 = vmmov 1  }
   0x2   :  { %v26_v1 = vld [vmem:[%s468_s1] sm:$0xff]  ;;  %337 = vmatprep.subr.msk.mxu0 %vm48_vm0, %v28_v0  ;;  %v30_v5 = vld [vmem:[%s469_s2 + $0x8] sm:$0xf]  ;;  %vm446_vm5 = vmpackc.low %vm150_vm3, %vm374_vm4  ;;  %v375_v21 = vmov 0.0|0.0   ;;  %vm376_vm6 = vmmov 0   ;;  %v377_v22 = vmov 0.0  }
   0x3   :  { %339 = vmatprep.mubr.msk.f32.mxu0 %vm41_vm1, %v26_v1  ;;  %v29_v4 = vld [vmem:[%s469_s2] sm:$0xff]  ;;  %338 = vmatpush3.msk.msra.mxu0 %vm48_vm0, %v28_v0  ;;  %v132_v9 = vld [vmem:[%s472_s4 + $0x8] sm:$0xf] }
   0x4   :  { %33 = vperm.xlu0 %371, %v29_v4   ;;  %340 = vmatmul.mubr.msk.f32.vlgmr.msra.gmra.mrb[0].mxu0 %vm41_vm1, %v27_v2  ;;  %v232_v6 = vld [vmem:[%s470_s6] sm:$0x3]  ;;  %v130_v20 = vld [vmem:[%s471_s3 + $0x8] sm:$0xf] }
   0x5   :  { %v129_v7 = vld [vmem:[%s471_s3] sm:$0xff]  ;;  %362 = vmatprep.subr.bf16.mxu0 %v375_v21  ;;  %353 = vmatprep.mubr.msk.f32.mxu0 %vm376_vm6, %v377_v22 }
   0x6   :  { %346 = vmatprep.mubr.msk.f32.mxu1 %vm143_vm2, %v129_v7  ;;  %v131_v8 = vld [vmem:[%s472_s4] sm:$0xff] }
   0x7   :  { %135 = vperm.xlu1 %372, %v131_v8   ;;  %v231_v32 = vld [vmem:[%s473_s5] sm:$0x3] }
   0x8   :  { %38 = vperm.xlu0 %371, %v30_v5  }
   0xb   :  { %140 = vperm.xlu1 %372, %v132_v9  }
   0xc   :  { %235 = vperm.xlu0 %371, %v232_v6  }
  0x83   :  { %v34_v10 = vpop.permute.xlu0 %33 }
  0x86   :  { %v136_v23 = vpop.permute.xlu1 %135 }
  0x87   :  { %v39_v11 = vpop.permute.xlu0 %38 }
  0x8a   :  { %v141_v24 = vpop.permute.xlu1 %140 }
  0x8b   :  { %v236_v33 = vpop.permute.xlu0 %235 }
  0xd7   :  { %v341_v12 = vpop.f32.mrb[0].mxu0 }
  0xd8   :  { %v124_v13 = vadd.f32 %v341_v12, %v39_v11  ;;  %v118_v14 = vpop.f32.mrb[1].mxu0 }
  0xd9   :  { %v119_v15 = vadd.f32 %v118_v14, %v34_v10 }
  0xda   :  { %v128_v16 = vmax.f32 %v124_v13, 0.0 }
  0xdb   :  { %v127_v17 = vmax.f32 %v119_v15, 0.0 }
  0xdd   :  { %v356_v19 = vpack.c.bf16 %v128_v16, %v127_v17 }
  0xdf   :  { %358 = vmatprep.subr.msk.bf16.mxu1 %vm446_vm5, %v356_v19 }
  0xe0   :  { %361 = vmatpush3.bf16.msk.msra.mxu1 %vm446_vm5, %v356_v19 }
  0xe3   :  { %347 = vmatmul.mubr.msk.f32.vlgmr.msra.gmra.mrb[0].mxu1 %vm143_vm2, %v130_v20 }
 0x1b6   :  { %v348_v25 = vpop.f32.mrb[0].mxu1 }
 0x1b7   :  { %v226_v26 = vadd.f32 %v348_v25, %v141_v24  ;;  %v220_v27 = vpop.f32.mrb[1].mxu1 }
 0x1b8   :  { %v221_v28 = vadd.f32 %v220_v27, %v136_v23 }
 0x1b9   :  { %v230_v29 = vmax.f32 %v226_v26, 0.0 }
 0x1ba   :  { %v229_v30 = vmax.f32 %v221_v28, 0.0 }
 0x1bc   :  { %v363_v31 = vpack.c.bf16 %v230_v29, %v229_v30 }
 0x1be   :  { %365 = vmatpush3.bf16.msk.msra.mxu0 %vm446_vm5, %v363_v31 }
 0x1c1   :  { %354 = vmatmul.mubr.msk.f32.vlgmr.msra.gmra.mrb[2].mxu0 %vm143_vm2, %v231_v32 }
 0x294   :  { %v310_v34 = vpop.f32.mrb[2].mxu0 }
 0x295   :  { %v311_v35 = vadd.f32 %v310_v34, %v236_v33  ;;  %v355_v36 = vpop.f32.mrb[3].mxu0 }
 0x297   :  { %314 = vst [vmem:[%s474_s7] sm:$0x3] %v311_v35 }

</bundles_post_ra>
